<compile_context>
chip_gen: v6e
topology: v6e:2x2x1
jax: 0.10.0
libtpu: 0.0.40
codegen_flags: <defaults>
</compile_context>

<pallas_src>
import jax
import jax.numpy as jnp
from jax.experimental import pallas as pl
from jax.experimental.pallas import tpu as pltpu

BN_EPS = 1e-5


def dense_embedding_kernel(x_ref, w_ref, b_ref, out_ref):
    # x_ref  : VMEM (TB, 1) f32  -- batch tile of the flattened dense feature
    # w_ref  : VMEM (1, D)  f32  -- BN-folded Linear(1, D).weight.T (reused every step)
    # b_ref  : VMEM (1, D)  f32  -- BN-folded bias row (zeros when bias=False, BN off)
    # out_ref: VMEM (TB, D)      -- lane-dense output tile, cast to consumer dtype
    out_ref[...] = (x_ref[...] * w_ref[...] + b_ref[...]).astype(out_ref.dtype)


def _select_block_rows(n_rows, d, out_itemsize, *,
                       target_tile_bytes=2 << 20,      # ~2 MiB output tile per step
                       vmem_budget_bytes=12 << 20):    # fits v5e 16 MiB scoped default
    """Pick the batch tile (rows per grid step), multiple of 8 sublanes."""
    # Double-buffered per-step VMEM per row:
    #   output tile:  D * out_itemsize bytes
    #   x column   :  (TB,1) f32 is stored in (8,128) tiles -> 512 bytes per row
    per_row = 2 * (d * out_itemsize + 512)
    tb = min(vmem_budget_bytes // per_row,
             max(1, target_tile_bytes // max(1, d * out_itemsize)))
    tb = int(tb)
    # Give v7x's two TensorCores work: prefer >= 2 grid steps when N allows it.
    if tb >= n_rows and n_rows > 8:
        tb = (n_rows + 1) // 2
    tb = max(8, min(tb, max(n_rows, 1)))
    return ((tb + 7) // 8) * 8          # sublane multiple (8, 128) constraint


def dense_embedding_forward(x, weight_t, bias=None, *, batch_norm=False,
                            bn_gamma=1.0, bn_beta=0.0, eps=BN_EPS,
                            out_dtype=jnp.float32, block_rows=None):
    """Forward of DenseEmbedding.

    x        : any shape, flattened to (-1, 1) like `input.view(-1, 1)`
    weight_t : (1, D)  == torch.nn.Linear(1, D).weight.T
    bias     : (D,) or None
    """
    x = jnp.asarray(x, jnp.float32).reshape(-1, 1)
    N = x.shape[0]
    D = weight_t.shape[1]
    weight_t = jnp.asarray(weight_t, jnp.float32).reshape(1, D)
    b_row = (jnp.zeros((1, D), jnp.float32) if bias is None
             else jnp.asarray(bias, jnp.float32).reshape(1, D))

    # ---- BatchNorm1d(1): global training-mode batch statistics, computed once in the
    # wrapper (on the unpadded x) and folded into the weight/bias rows, so the kernel
    # stays a single FMA and per-tile results match PyTorch BN exactly.
    if batch_norm:
        mean = jnp.mean(x)
        var = jnp.mean(jnp.square(x - mean))               # biased var (PyTorch BN)
        scale = jnp.float32(bn_gamma) / jnp.sqrt(var + eps)
        shift = jnp.float32(bn_beta) - mean * scale
        w_eff = weight_t * scale
        b_eff = shift * weight_t + b_row
    else:
        w_eff = weight_t
        b_eff = b_row

    out_dtype = jnp.dtype(out_dtype)
    TB = block_rows if block_rows is not None else _select_block_rows(
        N, D, out_dtype.itemsize)
    n_tiles = pl.cdiv(N, TB)                                # ragged last block is OK

    cost = pl.CostEstimate(
        flops=2 * N * D,
        transcendentals=0,
        bytes_accessed=N * D * out_dtype.itemsize + N * 4 + 2 * D * 4,
    )

    out = pl.pallas_call(
        dense_embedding_kernel,
        out_shape=jax.ShapeDtypeStruct((N, D), out_dtype),
        grid=(n_tiles,),
        in_specs=[
            pl.BlockSpec((TB, 1), lambda i: (i, 0)),        # batch tile of x
            pl.BlockSpec((1, D), lambda i: (0, 0)),         # folded weight row (reused)
            pl.BlockSpec((1, D), lambda i: (0, 0)),         # folded bias row (reused)
        ],
        out_specs=pl.BlockSpec((TB, D), lambda i: (i, 0)),  # lane-dense output tile
        compiler_params=pltpu.CompilerParams(
            dimension_semantics=("parallel",)),             # megacore batch split (v7x)
        cost_estimate=cost,
    )(x, w_eff, b_eff)

    return out


def reference(x, weight_t, bias, batch_norm, bn_gamma, bn_beta):
    x = jnp.asarray(x, jnp.float32).reshape(-1, 1)
    if batch_norm:
        mean = x.mean()
        var = jnp.square(x - mean).mean()
        x = (x - mean) / jnp.sqrt(var + BN_EPS) * bn_gamma + bn_beta
    out = x @ jnp.asarray(weight_t, jnp.float32)
    if bias is not None:
        out = out + jnp.asarray(bias, jnp.float32)
    return out


if __name__ == "__main__":
    key = jax.random.PRNGKey(0)
    k1, k2, k3 = jax.random.split(key, 3)

    D = 128                     # embedding_dim (lane-dense output width)
    x = jax.random.normal(k1, (25, 12), jnp.float32) * 3.0 + 1.5   # dense features, N=300
    N = x.size                  # non-multiple of the tile -> exercises the ragged block
    weight_t = jax.random.normal(k2, (1, D), jnp.float32) * 0.1    # Linear(1, D).weight.T
    bias = jax.random.normal(k3, (D,), jnp.float32) * 0.05

    # config 1: batch_norm=True, bias=False (recstudio dense_emb_norm=True, dense_emb_bias=False)
    out1 = jax.block_until_ready(
        dense_embedding_forward(x, weight_t, None, batch_norm=True,
                                bn_gamma=1.0, bn_beta=0.0))
    ref1 = reference(x, weight_t, None, True, 1.0, 0.0)
    assert out1.shape == (N, D), out1.shape
    assert jnp.allclose(out1, ref1, atol=1e-5, rtol=1e-5), float(jnp.abs(out1 - ref1).max())

    # config 2: batch_norm=False, bias=True (plain Linear path)
    out2 = jax.block_until_ready(
        dense_embedding_forward(x, weight_t, bias, batch_norm=False))
    ref2 = reference(x, weight_t, bias, False, 1.0, 0.0)
    assert out2.shape == (N, D), out2.shape
    assert jnp.allclose(out2, ref2, atol=1e-5, rtol=1e-5), float(jnp.abs(out2 - ref2).max())

    # config 3: consumer-dtype (bf16) output path — halves writeback bytes in-kernel.
    out3 = jax.block_until_ready(
        dense_embedding_forward(x, weight_t, bias, batch_norm=True,
                                out_dtype=jnp.bfloat16))
    ref3 = reference(x, weight_t, bias, True, 1.0, 0.0)
    assert out3.shape == (N, D) and out3.dtype == jnp.bfloat16
    assert jnp.allclose(out3.astype(jnp.float32), ref3, atol=3e-2, rtol=3e-2), \
        float(jnp.abs(out3.astype(jnp.float32) - ref3).max())

    print("KERNEL_OK")
</pallas_src>

<mosaic_0001>
module attributes {stable_mosaic.version = 11 : i64} {
  func.func @dense_embedding_kernel(%arg0: i32, %arg1: memref<152x1xf32, #tpu.memory_space<vmem>>, %arg2: memref<1x128xf32, #tpu.memory_space<vmem>>, %arg3: memref<1x128xf32, #tpu.memory_space<vmem>>, %arg4: memref<152x128xf32, #tpu.memory_space<vmem>>) attributes {dimension_semantics = [#tpu.dimension_semantics<parallel>], iteration_bounds = array<i64: 2>, scalar_prefetch = 0 : i64, scratch_operands = 0 : i64, tpu.core_type = #tpu.core_type<tc>, window_params = [{transform_indices = @transform_0, window_bounds = array<i64: 152, 1>}, {pipeline_mode = #tpu.pipeline_mode<synchronous>, transform_indices = @transform_1, window_bounds = array<i64: 1, 128>}, {pipeline_mode = #tpu.pipeline_mode<synchronous>, transform_indices = @transform_2, window_bounds = array<i64: 1, 128>}, {transform_indices = @transform_3, window_bounds = array<i64: 152, 128>}]} {
    %c0 = arith.constant 0 : index
    %c0_0 = arith.constant 0 : index
    %0 = vector.load %arg1[%c0, %c0_0] : memref<152x1xf32, #tpu.memory_space<vmem>>, vector<152x1xf32>
    %c0_1 = arith.constant 0 : index
    %c0_2 = arith.constant 0 : index
    %1 = vector.load %arg2[%c0_1, %c0_2] : memref<1x128xf32, #tpu.memory_space<vmem>>, vector<1x128xf32>
    %2 = vector.broadcast %0 : vector<152x1xf32> to vector<152x128xf32>
    %3 = vector.broadcast %1 : vector<1x128xf32> to vector<152x128xf32>
    %4 = arith.mulf %2, %3 : vector<152x128xf32>
    %c0_3 = arith.constant 0 : index
    %c0_4 = arith.constant 0 : index
    %5 = vector.load %arg3[%c0_3, %c0_4] : memref<1x128xf32, #tpu.memory_space<vmem>>, vector<1x128xf32>
    %6 = vector.broadcast %5 : vector<1x128xf32> to vector<152x128xf32>
    %7 = arith.addf %4, %6 : vector<152x128xf32>
    %c0_5 = arith.constant 0 : index
    %c0_6 = arith.constant 0 : index
    %8 = vector.load %arg4[%c0_5, %c0_6] : memref<152x128xf32, #tpu.memory_space<vmem>>, vector<152x128xf32>
    tpu.vector_store %arg4[%c0_5, %c0_6], %7 {strides = array<i32>} : memref<152x128xf32, #tpu.memory_space<vmem>>, vector<152x128xf32>,
    return
  }
  func.func @transform_0(%arg0: i32) -> (i32, i32) {
    %c0_i32 = arith.constant 0 : i32
    %c0_i32_0 = arith.constant 0 : i32
    return %arg0, %c0_i32 : i32, i32
  }
  func.func @transform_1(%arg0: i32) -> (i32, i32) {
    %c0_i32 = arith.constant 0 : i32
    %c0_i32_0 = arith.constant 0 : i32
    %c0_i32_1 = arith.constant 0 : i32
    return %c0_i32, %c0_i32_0 : i32, i32
  }
  func.func @transform_2(%arg0: i32) -> (i32, i32) {
    %c0_i32 = arith.constant 0 : i32
    %c0_i32_0 = arith.constant 0 : i32
    %c0_i32_1 = arith.constant 0 : i32
    return %c0_i32, %c0_i32_0 : i32, i32
  }
  func.func @transform_3(%arg0: i32) -> (i32, i32) {
    %c0_i32 = arith.constant 0 : i32
    %c0_i32_0 = arith.constant 0 : i32
    return %arg0, %c0_i32 : i32, i32
  }
}

</mosaic_0001>

<bundles_post_ra>
// kernel: tpu_custom_call.1
= control target key start
LH: loop header
LB: loop body
LE: loop exit
PB: predicated region body
PF: predicated region fallthrough
CT: control target
= control target key end

     0   :  { %8 = vsyncpa [#allocation3], 0  ;;  %s771_s0 = inlined_call_operand.vmem [shape: f32[300,1], index: 0, kind: input, shape index: {}]   ;;  %s772_s1 = inlined_call_operand.vmem [shape: f32[1,128], index: 1, kind: input, shape index: {}]   ;;  %s773_s2 = inlined_call_operand.vmem [shape: f32[1,128], index: 2, kind: input, shape index: {}]   ;;  %s774_s3 = inlined_call_operand.hbm [shape: f32[300,128], index: 3, kind: output, shape index: {}]  }
   0x1   :  { %10 = vsyncpa [#allocation3 + $0x1], 0  ;;  %s575_s12 = smov 0   ;;  %s577_s13 = smov 0  }
   0x2   :  { %s579_s14 = smov 0   ;;  %s581_s15 = smov 0  }
   0x3 LB: > { %s596_s16 = sadd.s32 4294967295, %s549_s15   ;;  %s433_s17 = sadd.s32 4294967294, %s549_s15   ;;  %s549_s15 = sphi %s581_s15, %s780_s15   ;;  %s545_s14 = sphi %s579_s14, %s779_s14   ;;  %s541_s13 = sphi %s577_s13, %s778_s13   ;;  %s537_s12 = sphi %s575_s12, %s777_s12  }
   0x4   : > { %s600_s18 = sadd.s32 1, %s549_s15   ;;  %s91_s19 = sadd.s32 1, %s545_s14 }
   0x5   : > { %s88_s20 = ssub.s32 %s549_s15, %s600_s18  ;;  %p101_p0 = scmp.ne.s32.totalorder %s545_s14, %s541_s13 }
   0x6   : > { %p89_p1 = scmp.eq.s32.totalorder %s88_s20, 0  ;;  %p102_p2 = scmp.eq.s32.totalorder %s596_s16, 1 }
   0x7   : > { %p107_p3 = scmp.ne.s32.totalorder %s541_s13, %s537_s12  ;;  %p108_p4 = scmp.eq.s32.totalorder %s433_s17, 1 }
   0x8   : > { %s611_s21 = scalar_select %p89_p1, %s545_s14, %s91_s19  }
   0x9   : > { %p613_p5 = por %p102_p2, %p101_p0  ;;  %p617_p6 = por %p108_p4, %p107_p3 }
   0xa   : > { %p436_p7 = scmp.ge.s32.totalorder %s549_s15, 1  ;;  %p141_p8 = scmp.lt.s32.totalorder %s549_s15, 3 }
   0xc   : > { %p142_p9 = pnand %p436_p7, %p141_p8 }
   0xd   : > { %s165_s24 = smul.u32 (!%p142_p9), 19, %s596_s16  ;;  %s162_s29 = sand.u32 (!%p142_p9), 1, %s541_s13  }
   0xe   : > { %145 = sbr.rel (%p142_p9) target bundleno = 201 (0xc9), region = 32 }
   0xf   : > { %p166_p10 = scmp.lt.s32.totalorder (!%p142_p9), %s165_s24, 37  ;;  %s444_s5 = smul.u32 (!%p142_p9), 152, %s162_s29 }
  0x10   : > { %s443_s9 = smul.u32 (!%p142_p9), 2432, %s596_s16  ;;  %s731_s16 = scalar_lea.sflag (!%p142_p9), [#allocation3], %s162_s29 }
  0x11   : > { %s665_s8 = scalar_lea.vmem (!%p142_p9), [#allocation2], %s444_s5 }
  0x12   : > { %s371_s10 = sshll.u32 (!%p142_p9), %s665_s8, 4  ;;  %s723_s19 = scalar_lea.hbm (!%p142_p9), %s774_s3, %s443_s9  ;;  %s725_s10 = int_to_ptr.vmem [resolvable:$true] %s371_s10 }
  0x13   : > { %v551_v0 = vmov 0   ;;  %s782_s24 = smov (!%p166_p10, %s165_s24), 37  ;;  %v652_v20 = vld [vmem:[%s772_s1] ss:$0 sm:$0xff]  ;;  %s489_s20 = scalar_lea.vmem %s725_s10, 2432 }
  0x14   : > { %488 = vset.pattern.permute.xlu1 %v551_v0  ;;  %487 = vset.pattern.permute.xlu0 %v551_v0  ;;  %s437_s25 = sshll.u32 %s782_s24, 3  ;;  %v659_v21 = vld [vmem:[%s773_s2] ss:$0 sm:$0xff]  ;;  %p490_p11 = scmp.ne.s32.totalorder %s725_s10, %s489_s20 }
  0x15   : > { %s627_s28 = scalar_lea.vmem %s771_s0, %s437_s25  ;;  %s552_s24 = smov [#allocation2]  }
  0x16   : > { %v174_v1 = vld [vmem:[%s627_s28 + $0x10] sm:$0xff]  ;;  %v172_v2 = vld [vmem:[%s627_s28] sm:$0xff]  ;;  %v175_v3 = vld [vmem:[%s627_s28 + $0x18] sm:$0xff]  ;;  %p491_p12 = pnand %p490_p11, %p613_p5  ;;  %s493_s25 = sshll.u32 %s552_s24, 4  ;;  %s494_s25 = int_to_ptr.vmem [resolvable:$false] %s493_s25 }
  0x17   : > { %204 = vperm.xlu1 %488, %v174_v1   ;;  %194 = vperm.xlu0 %487, %v172_v2   ;;  %v173_v4 = vld [vmem:[%s627_s28 + $0x8] sm:$0xff]  ;;  %v176_v6 = vld [vmem:[%s627_s28 + $0x20] sm:$0xff]  ;;  %v179_v7 = vld [vmem:[%s627_s28 + $0x38] sm:$0xff]  ;;  %s495_s26 = scalar_lea.vmem %s494_s25, 4864  ;;  %p496_p0 = scmp.lt.s32.totalorder %s725_s10, %s494_s25 }
  0x18   : > { %v177_v5 = vld [vmem:[%s627_s28 + $0x28] sm:$0xff]  ;;  %v178_v8 = vld [vmem:[%s627_s28 + $0x30] sm:$0xff]  ;;  %v180_v10 = vld [vmem:[%s627_s28 + $0x40] sm:$0xff]  ;;  %p492_p13 = pneg %p491_p12  ;;  %p497_p1 = scmp.lt.s32.totalorder %s495_s26, %s489_s20 }
  0x19   : > { %v181_v9 = vld [vmem:[%s627_s28 + $0x48] sm:$0xff]  ;;  %v183_v11 = vld [vmem:[%s627_s28 + $0x58] sm:$0xff]  ;;  %v182_v12 = vld [vmem:[%s627_s28 + $0x50] sm:$0xff] }
  0x1a   : > { %v185_v13 = vld [vmem:[%s627_s28 + $0x68] sm:$0xff]  ;;  %v184_v14 = vld [vmem:[%s627_s28 + $0x60] sm:$0xff]  ;;  %v187_v15 = vld [vmem:[%s627_s28 + $0x78] sm:$0xff]  ;;  %p498_p2 = por %p497_p1, %p496_p0 }
  0x1b   : > { %209 = vperm.xlu1 %488, %v175_v3   ;;  %199 = vperm.xlu0 %487, %v173_v4   ;;  %v186_v16 = vld [vmem:[%s627_s28 + $0x70] sm:$0xff]  ;;  %v189_v17 = vld [vmem:[%s627_s28 + $0x88] sm:$0xff]  ;;  %v188_v18 = vld [vmem:[%s627_s28 + $0x80] sm:$0xff] }
  0x1c   : > { %v190_v19 = vld [vmem:[%s627_s28 + $0x90] sm:$0xff]  ;;  %p499_p3 = pnand %p498_p2, %p492_p13 }
  0x1f   : > { %219 = vperm.xlu1 %488, %v177_v5   ;;  %214 = vperm.xlu0 %487, %v176_v6  }
  0x23   : > { %229 = vperm.xlu1 %488, %v179_v7   ;;  %224 = vperm.xlu0 %487, %v178_v8  }
  0x27   : > { %239 = vperm.xlu1 %488, %v181_v9   ;;  %234 = vperm.xlu0 %487, %v180_v10  }
  0x2b   : > { %249 = vperm.xlu1 %488, %v183_v11   ;;  %244 = vperm.xlu0 %487, %v182_v12  }
  0x2f   : > { %259 = vperm.xlu1 %488, %v185_v13   ;;  %254 = vperm.xlu0 %487, %v184_v14  }
  0x33   : > { %269 = vperm.xlu1 %488, %v187_v15   ;;  %264 = vperm.xlu0 %487, %v186_v16  }
  0x37   : > { %279 = vperm.xlu1 %488, %v189_v17   ;;  %274 = vperm.xlu0 %487, %v188_v18  }
  0x3b   : > { %284 = vperm.xlu0 %487, %v190_v19  }
  0x92   : > { %v205_v22 = vpop.permute.xlu1 %204  ;;  %v195_v23 = vpop.permute.xlu0 %194 }
  0x93   : > { %v295_v24 = vmul.f32 %v652_v20, %v205_v22  ;;  %v293_v25 = vmul.f32 %v652_v20, %v195_v23 }
  0x95   : > { %v321_v26 = vadd.f32 %v659_v21, %v295_v24  ;;  %v319_v27 = vadd.f32 %v659_v21, %v293_v25 }
  0x96   : > { %v210_v28 = vpop.permute.xlu1 %209  ;;  %v200_v29 = vpop.permute.xlu0 %199 }
  0x97   : > { %340 = vst [vmem:[%s665_s8 + $0x10] sm:$0xff] %v321_v26  ;;  %338 = vst [vmem:[%s665_s8] sm:$0xff] %v319_v27  ;;  %v296_v30 = vmul.f32 %v652_v20, %v210_v28  ;;  %v294_v31 = vmul.f32 %v652_v20, %v200_v29 }
  0x99   : > { %v322_v32 = vadd.f32 %v659_v21, %v296_v30  ;;  %v320_v33 = vadd.f32 %v659_v21, %v294_v31 }
  0x9a   : > { %v220_v34 = vpop.permute.xlu1 %219  ;;  %v215_v35 = vpop.permute.xlu0 %214 }
  0x9b   : > { %341 = vst [vmem:[%s665_s8 + $0x18] sm:$0xff] %v322_v32  ;;  %339 = vst [vmem:[%s665_s8 + $0x8] sm:$0xff] %v320_v33  ;;  %v298_v36 = vmul.f32 %v652_v20, %v220_v34  ;;  %v297_v37 = vmul.f32 %v652_v20, %v215_v35 }
  0x9d   : > { %v324_v38 = vadd.f32 %v659_v21, %v298_v36  ;;  %v323_v39 = vadd.f32 %v659_v21, %v297_v37 }
  0x9e   : > { %v230_v40 = vpop.permute.xlu1 %229  ;;  %v225_v41 = vpop.permute.xlu0 %224 }
  0x9f   : > { %343 = vst [vmem:[%s665_s8 + $0x28] sm:$0xff] %v324_v38  ;;  %342 = vst [vmem:[%s665_s8 + $0x20] sm:$0xff] %v323_v39  ;;  %v300_v42 = vmul.f32 %v652_v20, %v230_v40  ;;  %v299_v43 = vmul.f32 %v652_v20, %v225_v41 }
  0xa1   : > { %v326_v44 = vadd.f32 %v659_v21, %v300_v42  ;;  %v325_v45 = vadd.f32 %v659_v21, %v299_v43 }
  0xa2   : > { %v240_v46 = vpop.permute.xlu1 %239  ;;  %v235_v47 = vpop.permute.xlu0 %234 }
  0xa3   : > { %345 = vst [vmem:[%s665_s8 + $0x38] sm:$0xff] %v326_v44  ;;  %344 = vst [vmem:[%s665_s8 + $0x30] sm:$0xff] %v325_v45  ;;  %v302_v48 = vmul.f32 %v652_v20, %v240_v46  ;;  %v301_v49 = vmul.f32 %v652_v20, %v235_v47 }
  0xa5   : > { %v328_v50 = vadd.f32 %v659_v21, %v302_v48  ;;  %v327_v51 = vadd.f32 %v659_v21, %v301_v49 }
  0xa6   : > { %v250_v52 = vpop.permute.xlu1 %249  ;;  %v245_v53 = vpop.permute.xlu0 %244 }
  0xa7   : > { %347 = vst [vmem:[%s665_s8 + $0x48] sm:$0xff] %v328_v50  ;;  %346 = vst [vmem:[%s665_s8 + $0x40] sm:$0xff] %v327_v51  ;;  %v304_v54 = vmul.f32 %v652_v20, %v250_v52  ;;  %v303_v55 = vmul.f32 %v652_v20, %v245_v53 }
  0xa9   : > { %v330_v56 = vadd.f32 %v659_v21, %v304_v54  ;;  %v329_v57 = vadd.f32 %v659_v21, %v303_v55 }
  0xaa   : > { %v260_v58 = vpop.permute.xlu1 %259  ;;  %v255_v59 = vpop.permute.xlu0 %254 }
  0xab   : > { %349 = vst [vmem:[%s665_s8 + $0x58] sm:$0xff] %v330_v56  ;;  %348 = vst [vmem:[%s665_s8 + $0x50] sm:$0xff] %v329_v57  ;;  %v306_v60 = vmul.f32 %v652_v20, %v260_v58  ;;  %v305_v61 = vmul.f32 %v652_v20, %v255_v59 }
  0xad   : > { %v332_v62 = vadd.f32 %v659_v21, %v306_v60  ;;  %v331_v63 = vadd.f32 %v659_v21, %v305_v61 }
  0xae   : > { %v270_v0 = vpop.permute.xlu1 %269  ;;  %v265_v1 = vpop.permute.xlu0 %264 }
  0xaf   : > { %351 = vst [vmem:[%s665_s8 + $0x68] sm:$0xff] %v332_v62  ;;  %350 = vst [vmem:[%s665_s8 + $0x60] sm:$0xff] %v331_v63  ;;  %v308_v2 = vmul.f32 %v652_v20, %v270_v0  ;;  %v307_v3 = vmul.f32 %v652_v20, %v265_v1 }
  0xb1   : > { %v334_v4 = vadd.f32 %v659_v21, %v308_v2  ;;  %v333_v5 = vadd.f32 %v659_v21, %v307_v3 }
  0xb2   : > { %v280_v6 = vpop.permute.xlu1 %279  ;;  %v275_v7 = vpop.permute.xlu0 %274 }
  0xb3   : > { %353 = vst [vmem:[%s665_s8 + $0x78] sm:$0xff] %v334_v4  ;;  %352 = vst [vmem:[%s665_s8 + $0x70] sm:$0xff] %v333_v5  ;;  %v310_v8 = vmul.f32 %v652_v20, %v280_v6  ;;  %v309_v9 = vmul.f32 %v652_v20, %v275_v7 }
  0xb5   : > { %v336_v10 = vadd.f32 %v659_v21, %v310_v8  ;;  %v335_v11 = vadd.f32 %v659_v21, %v309_v9 }
  0xb6   : > { %v285_v12 = vpop.permute.xlu0 %284 }
  0xb7   : > { %355 = vst [vmem:[%s665_s8 + $0x88] sm:$0xff] %v336_v10  ;;  %354 = vst [vmem:[%s665_s8 + $0x80] sm:$0xff] %v335_v11  ;;  %v311_v13 = vmul.f32 %v652_v20, %v285_v12 }
  0xb9   : > { %v337_v14 = vadd.f32 %v659_v21, %v311_v13 }
  0xbb   : > { %356 = vst [vmem:[%s665_s8 + $0x90] sm:$0xff] %v337_v14 }
  0xbc   : > { %502 = shalt.err (!%p499_p3)
}
  0xbd   : > { %s503_s27 = scalar_lea.hbm %s723_s19, 2432  ;;  %s507_s30 = scalar_lea.hbm %s774_s3, 4864 }
  0xbe   : > { %p504_p4 = scmp.ne.s32.totalorder %s723_s19, %s503_s27  ;;  %p508_p9 = scmp.lt.s32.totalorder %s723_s19, %s774_s3 }
  0xbf   : > { %p509_p10 = scmp.lt.s32.totalorder %s507_s30, %s503_s27 }
  0xc0   : > { %p505_p7 = pnand %p504_p4, %p613_p5 }
  0xc1   : > { %p510_p11 = por %p509_p10, %p508_p9 }
  0xc2   : > { %p506_p8 = pneg %p505_p7 }
  0xc4   : > { %p511_p12 = pnand %p510_p11, %p506_p8 }
  0xc6   : > { %514 = shalt.err (!%p511_p12)
}
  0xc7   : > { %s553_s6 = smov 128   ;;  %s554_s7 = smov 8  }
  0xc8   : > { %445 = dma.vmem_to_hbm [thread:$0]  (%p613_p5), %s725_s10, 2432, %s723_s19, %s731_s16, %s553_s6, %s553_s6, %s554_s7  }
  0xc9 PF: > { %p451_p13 = scmp.ge.s32.totalorder %s549_s15, 2  ;;  %s386_s8 = sand.u32 1, %s537_s12  }
  0xca   : > { %s387_s9 = scalar_lea.sflag [#allocation3], %s386_s8 }
  0xcb   : > { %p448_p0 = pnand %p451_p13, %p617_p6 }
  0xcd   : > { %p449_p1 = pneg %p448_p0 }
  0xcf   : > { %532 = dma.done.wait (%p449_p1), %s387_s9, 2432  }
  0xd0   : > { %534 = vsyncadd (%p449_p1), %s387_s9, 4294964864  ;;  %p13_p2 = scmp.ge.s32.totalorder %s600_s18, 4   ;;  %s777_s12 = smov %s541_s13 }
  0xd1   : > { %s778_s13 = smov %s545_s14  ;;  %s779_s14 = smov %s611_s21 }
  0xd2   : > { %s780_s15 = smov %s600_s18  ;;  %15 = sbr.rel (!%p13_p2) target bundleno = 3 (0x3), region = 67 }
  0xd7   :  { %392 = vsyncpa [#allocation3], 1 }
  0xd8   :  { %394 = vsyncpa [#allocation3 + $0x1], 1 }

</bundles_post_ra>
